<compile_context>
chip_gen: v7x
topology: tpu7x:2x2x1
jax: 0.10.0
libtpu: 0.0.40
codegen_flags: <defaults>
</compile_context>

<pallas_src>
import numpy as np
import jax
import jax.numpy as jnp
from jax.experimental import pallas as pl
from jax.experimental.pallas import tpu as pltpu


def sum_of_numbers_up_to(n):
    return n * (n + 1) // 2


# ----------------------------- configuration -------------------------------
NUM_PARTICLES_BOSON = 1
NUM_PARTICLES_GLU = 3
OUT_DIM_PRENET_SEP = 8
HIDDEN_PRENET = 32
HIDDEN_LAYERS_PRENET = 2
HIDDEN_NET = 32
HIDDEN_LAYERS_NET = 2

N_PARTICLES = 2 + NUM_PARTICLES_BOSON + NUM_PARTICLES_GLU          # 6
INPUT_DIM_CONTRACTED = sum_of_numbers_up_to(N_PARTICLES - 1)       # 15
IN_SHAPE = 4 * N_PARTICLES + INPUT_DIM_CONTRACTED                  # 39
NET_IN = OUT_DIM_PRENET_SEP * (2 + NUM_PARTICLES_BOSON + 1) + INPUT_DIM_CONTRACTED  # 47

BATCH = 8

_N_PARAMS_PRENET = 2 * (HIDDEN_LAYERS_PRENET + 1)   # (W, b) per linear layer
_N_PARAMS_NET = 2 * (HIDDEN_LAYERS_NET + 1)

# ----------------------- packed-parameter layout ----------------------------
_H = HIDDEN_PRENET                    # 32  prenet hidden width per particle
_F = OUT_DIM_PRENET_SEP               # 8   prenet output width per particle
PC = N_PARTICLES * _H                 # 192 fused prenet lane width
CARRY = HIDDEN_NET                    # 32  carried invariants-partial lanes
CARRY_A = PC                          # 192 carry offset in wide (A/B) stage
WIDE = 256                            # lane width of layers A/B (vreg aligned)
NARROW = 128                          # lane width of layers C/D/E
CARRY_C = NARROW - CARRY              # 96  carry offset in narrow (C) stage
IN_PAD = 40                           # reserved rows for layer-A weight (8-aligned)

OFF_WA = 0                            # (IN_SHAPE, WIDE)   fused layer 1 + invariants
OFF_WB = OFF_WA + IN_PAD              # 40   (WIDE, WIDE)  fused layer 2 + identity carry
OFF_WC = OFF_WB + WIDE                # 296  (WIDE, NARROW) fused layer 3 + identity carry
OFF_WD = OFF_WC + WIDE                # 552  (NARROW, NARROW) net layer 0 + carry routing
OFF_WE = OFF_WD + NARROW              # 680  (NARROW, NARROW) net layer 1
OFF_BIAS = OFF_WE + NARROW            # 808  bias / vector rows (8-aligned)
# bias row indices: 0=bA 1=bB 2=bC 3=bD 4=bE 5=w_net_last 6=b_net_last 7=relu_mask
P_ROWS = OFF_BIAS + 8                 # 816
P_COLS = WIDE                         # 256

PARTICLE_TYPE = [0, 0, 1] + [2] * NUM_PARTICLES_GLU   # 0=ini, 1=boson, 2=jet


# ------------------------------ parameters ---------------------------------
def init_mlp_params(key, in_dim, hidden, n_hidden_layers, out_dim):
    """Deterministic synthetic init.  Returns flat list [W0, b0, W1, b1, ...]."""
    dims = [in_dim] + [hidden] * n_hidden_layers + [out_dim]
    params = []
    for i in range(len(dims) - 1):
        key, kw, kb = jax.random.split(key, 3)
        w = jax.random.normal(kw, (dims[i], dims[i + 1]), jnp.float32) / jnp.sqrt(
            jnp.float32(dims[i]))
        b = 0.01 * jax.random.normal(kb, (1, dims[i + 1]), jnp.float32)
        params += [w, b]
    return params, key


def init_dsi_params(key):
    p_ini, key = init_mlp_params(key, 4, HIDDEN_PRENET, HIDDEN_LAYERS_PRENET,
                                 OUT_DIM_PRENET_SEP)
    p_boson, key = init_mlp_params(key, 4, HIDDEN_PRENET, HIDDEN_LAYERS_PRENET,
                                   OUT_DIM_PRENET_SEP)
    p_jet, key = init_mlp_params(key, 4, HIDDEN_PRENET, HIDDEN_LAYERS_PRENET,
                                 OUT_DIM_PRENET_SEP)
    p_net, key = init_mlp_params(key, NET_IN, HIDDEN_NET, HIDDEN_LAYERS_NET, 1)
    return p_ini + p_boson + p_jet + p_net, key


def pack_params(params):
    """Pack all DSI parameters into one (P_ROWS, P_COLS) f32 buffer.

    Layer A  (IN_SHAPE,WIDE): block-diag prenet layer-1 in lanes 0:192 and the
      invariants part of net layer-0 (x @ W_inv) in lanes 192:224.
    Layer B  (WIDE,WIDE): block-diag prenet layer-2, identity carry 192:224.
    Layer C  (WIDE,NARROW): block-diag prenet layer-3 -> lanes 0:48 (particle
      features), identity carry -> lanes 96:128.
    Layer D  (NARROW,NARROW): net layer-0 weight with the jet Deep-Sets sum
      folded in (jet rows repeated), carried partial routed via identity.
    Layer E  (NARROW,NARROW): net layer-1.
    Bias rows: bA bB bC bD bE, final-layer weight row, final bias, ReLU mask.
    """
    p_ini = params[0:_N_PARAMS_PRENET]
    p_boson = params[_N_PARAMS_PRENET:2 * _N_PARAMS_PRENET]
    p_jet = params[2 * _N_PARAMS_PRENET:3 * _N_PARAMS_PRENET]
    p_net = params[3 * _N_PARAMS_PRENET:3 * _N_PARAMS_PRENET + _N_PARAMS_NET]
    prenets = [p_ini, p_boson, p_jet]

    buf = np.zeros((P_ROWS, P_COLS), np.float32)

    # --- fused (block-diagonal) prenets over all N_PARTICLES particles ------
    for i, t in enumerate(PARTICLE_TYPE):
        w1, b1, w2, b2, w3, b3 = (np.asarray(a) for a in prenets[t])
        # layer A: x columns 4i:4i+4 -> lanes 32i:32i+32
        buf[OFF_WA + 4 * i:OFF_WA + 4 * i + 4, _H * i:_H * i + _H] = w1
        buf[OFF_BIAS + 0, _H * i:_H * i + _H] = b1[0]
        # layer B: hidden block -> hidden block
        buf[OFF_WB + _H * i:OFF_WB + _H * i + _H, _H * i:_H * i + _H] = w2
        buf[OFF_BIAS + 1, _H * i:_H * i + _H] = b2[0]
        # layer C: hidden block -> feature lanes 8i:8i+8 (no activation after)
        buf[OFF_WC + _H * i:OFF_WC + _H * i + _H, _F * i:_F * i + _F] = w3
        buf[OFF_BIAS + 2, _F * i:_F * i + _F] = b3[0]

    # --- carried invariants path (folds the 2nd x-matmul into layer A) ------
    w_net0 = np.asarray(p_net[0])                      # (NET_IN, HIDDEN_NET)
    n_lat = _F * (2 + NUM_PARTICLES_BOSON + 1)         # 32 latent rows of w_net0
    inv_rows = w_net0[n_lat:, :]                       # (15, 32) invariants rows
    buf[OFF_WA + 4 * N_PARTICLES:OFF_WA + 4 * N_PARTICLES + INPUT_DIM_CONTRACTED,
        CARRY_A:CARRY_A + CARRY] = inv_rows
    buf[OFF_WB + CARRY_A:OFF_WB + CARRY_A + CARRY,
        CARRY_A:CARRY_A + CARRY] = np.eye(CARRY, dtype=np.float32)
    buf[OFF_WC + CARRY_A:OFF_WC + CARRY_A + CARRY,
        CARRY_C:CARRY_C + CARRY] = np.eye(CARRY, dtype=np.float32)

    # --- layer D: net layer 0 (jet Deep-Sets sum folded in) -----------------
    jet_rows = w_net0[_F * (2 + NUM_PARTICLES_BOSON):
                      _F * (2 + NUM_PARTICLES_BOSON) + _F, :]
    for i in range(N_PARTICLES):
        if i < 2 + NUM_PARTICLES_BOSON:
            rows = w_net0[_F * i:_F * i + _F, :]       # own latent block
        else:
            rows = jet_rows                            # repeated -> jet sum
        buf[OFF_WD + _F * i:OFF_WD + _F * i + _F, 0:HIDDEN_NET] = rows
    # carried invariants partial -> columns 0:32
    buf[OFF_WD + CARRY_C:OFF_WD + CARRY_C + CARRY,
        0:HIDDEN_NET] = np.eye(CARRY, dtype=np.float32)
    buf[OFF_BIAS + 3, 0:HIDDEN_NET] = np.asarray(p_net[1])[0]

    # --- layer E: net layer 1 ------------------------------------------------
    buf[OFF_WE:OFF_WE + HIDDEN_NET, 0:HIDDEN_NET] = np.asarray(p_net[2])
    buf[OFF_BIAS + 4, 0:HIDDEN_NET] = np.asarray(p_net[3])[0]

    # --- final layer (32 -> 1), done on the VPU in the kernel ----------------
    buf[OFF_BIAS + 5, 0:HIDDEN_NET] = np.asarray(p_net[4])[:, 0]
    buf[OFF_BIAS + 6, 0] = float(np.asarray(p_net[5])[0, 0])

    # --- masked-ReLU lane mask (1 on prenet lanes, 0 on carried lanes) -------
    buf[OFF_BIAS + 7, 0:PC] = 1.0

    return jnp.asarray(buf)


# ------------------------------- kernel ------------------------------------
def dsi_kernel(x_ref, p_ref, out_ref):
    x = x_ref[...]                                     # (TB, IN_SHAPE)
    rows = p_ref[OFF_BIAS:OFF_BIAS + 8, :]             # aligned (8, 256) load
    b_a = rows[0:1, :]
    b_b = rows[1:2, :]
    b_c = rows[2:3, 0:NARROW]
    b_d = rows[3:4, 0:NARROW]
    b_e = rows[4:5, 0:NARROW]
    w_last = rows[5:6, 0:NARROW]                       # cols >=32 are 0
    b_last = rows[6:7, 0:1]
    relu_mask = rows[7:8, :]                           # 1.0 prenet lanes, 0.0 carry

    # layer A: fused prenet layer 1 (lanes 0:192) + invariants partial x@W_inv
    # (lanes 192:224).  Masked ReLU lets the carried partial pass through.
    h = jnp.dot(x, p_ref[OFF_WA:OFF_WA + IN_SHAPE, :],
                preferred_element_type=jnp.float32) + b_a
    h = h - relu_mask * jnp.minimum(h, 0.0)

    # layer B: block-diagonal prenet layer 2 + identity carry.
    h = jnp.dot(h, p_ref[OFF_WB:OFF_WB + WIDE, :],
                preferred_element_type=jnp.float32) + b_b
    h = h - relu_mask * jnp.minimum(h, 0.0)

    # layer C: prenet layer 3 -> feature lanes 0:48; carry -> lanes 96:128.
    # Whole net stage from here on is a single 128-lane slab.
    h = jnp.dot(h, p_ref[OFF_WC:OFF_WC + WIDE, 0:NARROW],
                preferred_element_type=jnp.float32) + b_c

    # layer D: net layer 0 (concat + jet Deep-Sets sum folded into the weight,
    # carried invariants partial routed in via identity rows).
    g = jnp.dot(h, p_ref[OFF_WD:OFF_WD + NARROW, 0:NARROW],
                preferred_element_type=jnp.float32) + b_d
    g = jnp.maximum(g, 0.0)

    # layer E: net layer 1.
    g = jnp.dot(g, p_ref[OFF_WE:OFF_WE + NARROW, 0:NARROW],
                preferred_element_type=jnp.float32) + b_e
    g = jnp.maximum(g, 0.0)

    # net layer 2 (32 -> 1): VPU multiply + lane reduction (no MXU pass).
    out_ref[...] = jnp.sum(g * w_last, axis=-1, keepdims=True) + b_last


def dsi_forward(x, packed_params, *, tile_b=None):
    B = x.shape[0]
    if tile_b is None:
        # Large default tile amortizes the ~0.35us per-grid-step overhead; at
        # the demo batch this collapses to a single 8-row step.  Sweep
        # 1024-4096 at very large B (keep an eye on v7x's 64 MiB VMEM).
        tile_b = min(1024, ((B + 7) // 8) * 8)
    tile_b = max(8, ((tile_b + 7) // 8) * 8)
    n_tiles = pl.cdiv(B, tile_b)
    b_pad = n_tiles * tile_b

    x = x.astype(jnp.float32)
    if b_pad != B:
        # Batch-only pad (feature axis is consumed at its natural width 39, so
        # the previous per-call feature pad copy is gone).  Padded rows produce
        # garbage that is sliced off below - keep that slice intact.
        x = jnp.pad(x, ((0, b_pad - B), (0, 0)))

    flops = 2 * b_pad * (IN_SHAPE * WIDE + WIDE * WIDE + WIDE * NARROW
                         + NARROW * NARROW + NARROW * NARROW + NARROW)
    bytes_accessed = b_pad * (IN_SHAPE + 1) * 4 + P_ROWS * P_COLS * 4

    out = pl.pallas_call(
        dsi_kernel,
        out_shape=jax.ShapeDtypeStruct((b_pad, 1), jnp.float32),
        grid=(n_tiles,),
        in_specs=[
            pl.BlockSpec((tile_b, IN_SHAPE), lambda i: (i, 0)),
            pl.BlockSpec((P_ROWS, P_COLS), lambda i: (0, 0)),   # params resident
        ],
        out_specs=pl.BlockSpec((tile_b, 1), lambda i: (i, 0)),
        compiler_params=pltpu.CompilerParams(
            # "parallel" lets v7x shard tiles across both TensorCores when
            # n_tiles >= 2; raise the scoped VMEM limit so big tiles fit on
            # v5e's 16 MiB default while staying well under v7x's 64 MiB.
            dimension_semantics=("parallel",),
            vmem_limit_bytes=40 * 1024 * 1024),
        cost_estimate=pl.CostEstimate(flops=flops, transcendentals=0,
                                      bytes_accessed=bytes_accessed),
    )(x, packed_params)
    return out[:B] if b_pad != B else out


# --------------------------- pure-JAX reference -----------------------------
def dsi_reference(x, params):
    p_ini = params[0:_N_PARAMS_PRENET]
    p_boson = params[_N_PARAMS_PRENET:2 * _N_PARAMS_PRENET]
    p_jet = params[2 * _N_PARAMS_PRENET:3 * _N_PARAMS_PRENET]
    p_net = params[3 * _N_PARAMS_PRENET:3 * _N_PARAMS_PRENET + _N_PARAMS_NET]

    def mlp(h, p):
        n_layers = len(p) // 2
        for l in range(n_layers):
            h = h @ p[2 * l] + p[2 * l + 1]
            if l < n_layers - 1:
                h = jnp.maximum(h, 0.0)
        return h

    B = x.shape[0]
    particles = x[:, :4 * N_PARTICLES].reshape(B, N_PARTICLES, 4)
    invariants = x[:, 4 * N_PARTICLES:]
    ds_ini = mlp(particles[:, :2].reshape(B * 2, 4), p_ini).reshape(B, -1)
    ds_bos = mlp(particles[:, 2:2 + NUM_PARTICLES_BOSON].reshape(
        B * NUM_PARTICLES_BOSON, 4), p_boson).reshape(B, -1)
    ds_jet = mlp(particles[:, 2 + NUM_PARTICLES_BOSON:].reshape(
        B * NUM_PARTICLES_GLU, 4), p_jet).reshape(B, NUM_PARTICLES_GLU, -1).sum(axis=1)
    latent = jnp.concatenate([ds_ini, ds_bos, ds_jet, invariants], axis=1)
    return mlp(latent, p_net)


# --------------------------------- main -------------------------------------
if __name__ == "__main__":
    key = jax.random.PRNGKey(0)
    params, key = init_dsi_params(key)
    packed = pack_params(params)
    key, kx = jax.random.split(key)
    x = jax.random.normal(kx, (BATCH, IN_SHAPE), jnp.float32)

    out = jax.block_until_ready(dsi_forward(x, packed))
    ref = jax.block_until_ready(dsi_reference(x, params))

    assert out.shape == (BATCH, 1), out.shape
    # Tolerance accounts for default TPU matmul precision (bf16 operand
    # rounding) plus the identity-carry of the invariants partial through the
    # three fused MXU passes (a few extra bf16 roundings of one O(1)
    # contribution); observed differences are O(1e-4)-O(1e-3).
    assert jnp.allclose(out, ref, atol=1e-2, rtol=1e-2), (out, ref)
    print("KERNEL_OK")
</pallas_src>

<mosaic_0001>
module attributes {stable_mosaic.version = 11 : i64} {
  func.func @dsi_kernel(%arg0: i32, %arg1: memref<8x39xf32, #tpu.memory_space<vmem>>, %arg2: memref<816x256xf32, #tpu.memory_space<vmem>>, %arg3: memref<8x1xf32, #tpu.memory_space<vmem>>) attributes {dimension_semantics = [#tpu.dimension_semantics<parallel>], iteration_bounds = array<i64: 1>, scalar_prefetch = 0 : i64, scratch_operands = 0 : i64, tpu.core_type = #tpu.core_type<tc>, window_params = [{transform_indices = @transform_0, window_bounds = array<i64: 8, 39>}, {pipeline_mode = #tpu.pipeline_mode<synchronous>, transform_indices = @transform_1, window_bounds = array<i64: 816, 256>}, {transform_indices = @transform_2, window_bounds = array<i64: 8, 1>}]} {
    %c0 = arith.constant 0 : index
    %c0_0 = arith.constant 0 : index
    %0 = vector.load %arg1[%c0, %c0_0] : memref<8x39xf32, #tpu.memory_space<vmem>>, vector<8x39xf32>
    %c808 = arith.constant 808 : index
    %c0_1 = arith.constant 0 : index
    %1 = vector.load %arg2[%c808, %c0_1] : memref<816x256xf32, #tpu.memory_space<vmem>>, vector<8x256xf32>
    %2 = vector.extract_strided_slice %1 {offsets = [0, 0], sizes = [1, 256], strides = [1, 1]} : vector<8x256xf32> to vector<1x256xf32>
    %3 = vector.extract_strided_slice %1 {offsets = [1, 0], sizes = [1, 256], strides = [1, 1]} : vector<8x256xf32> to vector<1x256xf32>
    %4 = vector.extract_strided_slice %1 {offsets = [2, 0], sizes = [1, 128], strides = [1, 1]} : vector<8x256xf32> to vector<1x128xf32>
    %5 = vector.extract_strided_slice %1 {offsets = [3, 0], sizes = [1, 128], strides = [1, 1]} : vector<8x256xf32> to vector<1x128xf32>
    %6 = vector.extract_strided_slice %1 {offsets = [4, 0], sizes = [1, 128], strides = [1, 1]} : vector<8x256xf32> to vector<1x128xf32>
    %7 = vector.extract_strided_slice %1 {offsets = [5, 0], sizes = [1, 128], strides = [1, 1]} : vector<8x256xf32> to vector<1x128xf32>
    %8 = vector.extract_strided_slice %1 {offsets = [6, 0], sizes = [1, 1], strides = [1, 1]} : vector<8x256xf32> to vector<1x1xf32>
    %9 = vector.extract_strided_slice %1 {offsets = [7, 0], sizes = [1, 256], strides = [1, 1]} : vector<8x256xf32> to vector<1x256xf32>
    %c0_2 = arith.constant 0 : index
    %c0_3 = arith.constant 0 : index
    %10 = vector.load %arg2[%c0_2, %c0_3] : memref<816x256xf32, #tpu.memory_space<vmem>>, vector<39x256xf32>
    %cst = arith.constant dense<0.000000e+00> : vector<8x256xf32>
    %11 = tpu.matmul %0, %10, %cst {dimension_numbers = #tpu.dot_dimension_numbers<[1], [0], [0], [1], [0, 0, 1, 1], [], []>} : vector<8x39xf32>, vector<39x256xf32>, vector<8x256xf32> -> vector<8x256xf32>
    %12 = vector.broadcast %2 : vector<1x256xf32> to vector<8x256xf32>
    %13 = arith.addf %11, %12 : vector<8x256xf32>
    %cst_4 = arith.constant 0.000000e+00 : f32
    %14 = vector.broadcast %cst_4 : f32 to vector<8x256xf32>
    %15 = arith.minimumf %13, %14 : vector<8x256xf32>
    %16 = vector.broadcast %9 : vector<1x256xf32> to vector<8x256xf32>
    %17 = arith.mulf %16, %15 : vector<8x256xf32>
    %18 = arith.subf %13, %17 : vector<8x256xf32>
    %c40 = arith.constant 40 : index
    %c0_5 = arith.constant 0 : index
    %19 = vector.load %arg2[%c40, %c0_5] : memref<816x256xf32, #tpu.memory_space<vmem>>, vector<256x256xf32>
    %cst_6 = arith.constant dense<0.000000e+00> : vector<8x256xf32>
    %20 = tpu.matmul %18, %19, %cst_6 {dimension_numbers = #tpu.dot_dimension_numbers<[1], [0], [0], [1], [0, 0, 1, 1], [], []>} : vector<8x256xf32>, vector<256x256xf32>, vector<8x256xf32> -> vector<8x256xf32>
    %21 = vector.broadcast %3 : vector<1x256xf32> to vector<8x256xf32>
    %22 = arith.addf %20, %21 : vector<8x256xf32>
    %cst_7 = arith.constant 0.000000e+00 : f32
    %23 = vector.broadcast %cst_7 : f32 to vector<8x256xf32>
    %24 = arith.minimumf %22, %23 : vector<8x256xf32>
    %25 = vector.broadcast %9 : vector<1x256xf32> to vector<8x256xf32>
    %26 = arith.mulf %25, %24 : vector<8x256xf32>
    %27 = arith.subf %22, %26 : vector<8x256xf32>
    %c296 = arith.constant 296 : index
    %c0_8 = arith.constant 0 : index
    %28 = vector.load %arg2[%c296, %c0_8] : memref<816x256xf32, #tpu.memory_space<vmem>>, vector<256x128xf32>
    %cst_9 = arith.constant dense<0.000000e+00> : vector<8x128xf32>
    %29 = tpu.matmul %27, %28, %cst_9 {dimension_numbers = #tpu.dot_dimension_numbers<[1], [0], [0], [1], [0, 0, 1, 1], [], []>} : vector<8x256xf32>, vector<256x128xf32>, vector<8x128xf32> -> vector<8x128xf32>
    %30 = vector.broadcast %4 : vector<1x128xf32> to vector<8x128xf32>
    %31 = arith.addf %29, %30 : vector<8x128xf32>
    %c552 = arith.constant 552 : index
    %c0_10 = arith.constant 0 : index
    %32 = vector.load %arg2[%c552, %c0_10] : memref<816x256xf32, #tpu.memory_space<vmem>>, vector<128x128xf32>
    %cst_11 = arith.constant dense<0.000000e+00> : vector<8x128xf32>
    %33 = tpu.matmul %31, %32, %cst_11 {dimension_numbers = #tpu.dot_dimension_numbers<[1], [0], [0], [1], [0, 0, 1, 1], [], []>} : vector<8x128xf32>, vector<128x128xf32>, vector<8x128xf32> -> vector<8x128xf32>
    %34 = vector.broadcast %5 : vector<1x128xf32> to vector<8x128xf32>
    %35 = arith.addf %33, %34 : vector<8x128xf32>
    %cst_12 = arith.constant 0.000000e+00 : f32
    %36 = vector.broadcast %cst_12 : f32 to vector<8x128xf32>
    %37 = arith.maximumf %35, %36 : vector<8x128xf32>
    %c680 = arith.constant 680 : index
    %c0_13 = arith.constant 0 : index
    %38 = vector.load %arg2[%c680, %c0_13] : memref<816x256xf32, #tpu.memory_space<vmem>>, vector<128x128xf32>
    %cst_14 = arith.constant dense<0.000000e+00> : vector<8x128xf32>
    %39 = tpu.matmul %37, %38, %cst_14 {dimension_numbers = #tpu.dot_dimension_numbers<[1], [0], [0], [1], [0, 0, 1, 1], [], []>} : vector<8x128xf32>, vector<128x128xf32>, vector<8x128xf32> -> vector<8x128xf32>
    %40 = vector.broadcast %6 : vector<1x128xf32> to vector<8x128xf32>
    %41 = arith.addf %39, %40 : vector<8x128xf32>
    %cst_15 = arith.constant 0.000000e+00 : f32
    %42 = vector.broadcast %cst_15 : f32 to vector<8x128xf32>
    %43 = arith.maximumf %41, %42 : vector<8x128xf32>
    %44 = vector.broadcast %7 : vector<1x128xf32> to vector<8x128xf32>
    %45 = arith.mulf %43, %44 : vector<8x128xf32>
    %cst_16 = arith.constant dense<0.000000e+00> : vector<8xf32>
    %46 = vector.multi_reduction <add>, %45, %cst_16 [1] : vector<8x128xf32> to vector<8xf32>
    %47 = vector.shape_cast %46 : vector<8xf32> to vector<8x1xf32>
    %48 = vector.broadcast %8 : vector<1x1xf32> to vector<8x1xf32>
    %49 = arith.addf %47, %48 : vector<8x1xf32>
    %c0_17 = arith.constant 0 : index
    %c0_18 = arith.constant 0 : index
    %50 = vector.load %arg3[%c0_17, %c0_18] : memref<8x1xf32, #tpu.memory_space<vmem>>, vector<8x1xf32>
    tpu.vector_store %arg3[%c0_17, %c0_18], %49 {strides = array<i32>} : memref<8x1xf32, #tpu.memory_space<vmem>>, vector<8x1xf32>,
    return
  }
  func.func @transform_0(%arg0: i32) -> (i32, i32) {
    %c0_i32 = arith.constant 0 : i32
    %c0_i32_0 = arith.constant 0 : i32
    return %arg0, %c0_i32 : i32, i32
  }
  func.func @transform_1(%arg0: i32) -> (i32, i32) {
    %c0_i32 = arith.constant 0 : i32
    %c0_i32_0 = arith.constant 0 : i32
    %c0_i32_1 = arith.constant 0 : i32
    return %c0_i32, %c0_i32_0 : i32, i32
  }
  func.func @transform_2(%arg0: i32) -> (i32, i32) {
    %c0_i32 = arith.constant 0 : i32
    %c0_i32_0 = arith.constant 0 : i32
    return %arg0, %c0_i32 : i32, i32
  }
}

</mosaic_0001>

<bundles_post_ra>
// kernel: tpu_custom_call.1
= control target key start
LH: loop header
LB: loop body
LE: loop exit
PB: predicated region body
PF: predicated region fallthrough
CT: control target
= control target key end

     0   :  { %7 = vsyncpa [#allocation3], 0  ;;  %s1057_s0 = inlined_call_operand.hbm [shape: f32[8,39], index: 0, kind: input, shape index: {}]   ;;  %s1058_s1 = inlined_call_operand.hbm [shape: f32[816,256], index: 1, kind: input, shape index: {}]   ;;  %s1059_s2 = inlined_call_operand.vmem [shape: f32[8,1], index: 2, kind: output, shape index: {}]  }
   0x1   :  { %8 = vsyncpa [#allocation5], 0  ;;  %s960_s9 = smov [#allocation2]   ;;  %s961_s11 = smov [#allocation4]  }
   0x2   :  { %s15_s10 = sshll.u32 %s960_s9, 4  ;;  %s24_s12 = sshll.u32 %s961_s11, 4  ;;  %s16_s10 = int_to_ptr.vmem [resolvable:$true] %s15_s10  ;;  %s982_s12 = int_to_ptr.vmem [resolvable:$true] %s24_s12 }
   0x3   :  { %s912_s15 = scalar_lea.hbm %s1057_s0, 128 }
   0x4   :  { %p913_p0 = scmp.ne.s32.totalorder %s1057_s0, %s912_s15  ;;  %p916_p1 = scmp.lt.u32.totalorder %s912_s15, %s1057_s0 }
   0x6   :  { %p918_p2 = pnand %p916_p1, %p913_p0 }
   0x8   :  { %921 = shalt.err (!%p918_p2)
}
   0x9   :  { %s922_s20 = scalar_lea.vmem %s16_s10, 128  ;;  %p927_p4 = scmp.lt.s32.totalorder %s16_s10, %s16_s10 }
   0xa   :  { %p923_p3 = scmp.ne.s32.totalorder %s16_s10, %s922_s20  ;;  %p928_p5 = scmp.lt.s32.totalorder %s922_s20, %s922_s20 }
   0xc   :  { %p929_p6 = por %p928_p5, %p927_p4 }
   0xe   :  { %p930_p7 = pnand %p929_p6, %p923_p3 }
  0x10   :  { %933 = shalt.err (!%p930_p7)
}
  0x11   :  { %18 = dma.hbm_to_vmem [thread:$0]  %s1057_s0, 128, %s16_s10, [#allocation3]  }
  0x12   :  { %s934_s25 = scalar_lea.hbm %s1058_s1, 26112 }
  0x13   :  { %p935_p8 = scmp.ne.s32.totalorder %s1058_s1, %s934_s25  ;;  %p938_p9 = scmp.lt.u32.totalorder %s934_s25, %s1058_s1 }
  0x15   :  { %p940_p10 = pnand %p938_p9, %p935_p8 }
  0x17   :  { %943 = shalt.err (!%p940_p10)
}
  0x18   :  { %s944_s30 = scalar_lea.vmem %s982_s12, 26112  ;;  %p949_p12 = scmp.lt.s32.totalorder %s982_s12, %s982_s12 }
  0x19   :  { %p945_p11 = scmp.ne.s32.totalorder %s982_s12, %s944_s30  ;;  %p950_p13 = scmp.lt.s32.totalorder %s944_s30, %s944_s30 }
  0x1b   :  { %p951_p0 = por %p950_p13, %p949_p12 }
  0x1d   :  { %p952_p1 = pnand %p951_p0, %p945_p11 }
  0x1f   :  { %955 = shalt.err (!%p952_p1)
}
  0x20   :  { %s962_s0 = smov 256   ;;  %s963_s3 = smov 16  }
  0x21   :  { %30 = dma.hbm_to_vmem [thread:$0]  %s1058_s1, 26112, %s982_s12, [#allocation5], %s962_s0, %s962_s0, %s963_s3  }
  0x22   :  { %956 = dma.done.wait [#allocation3], 128  }
  0x23   :  { %957 = vsyncadd [#allocation3], 4294967168 }
  0x24   :  { %958 = dma.done.wait [#allocation5], 26112  }
  0x25   :  { %959 = vsyncadd [#allocation5], 4294941184  ;;  %v964_v0 = vmov 0.0   ;;  %v41_v1 = vld [vmem:[#allocation4 + $0x8] sm:$0xff]  ;;  %v43_v2 = vld [vmem:[#allocation4 + $0x18] sm:$0xff]  ;;  %vm62_vm0 = vcmask 1046528  }
  0x26   :  { %133 = vmatprep.mubr.f32.mxu0 %v964_v0  ;;  %v40_v3 = vld [vmem:[#allocation4] sm:$0xff]  ;;  %v753_v4 = vpack.c.bf16 %v43_v2, %v41_v1  ;;  %v42_v5 = vld [vmem:[#allocation4 + $0x10] sm:$0xff]  ;;  %v45_v6 = vld [vmem:[#allocation4 + $0x28] sm:$0xff]  ;;  %vm58_vm1 = vcmask 318464   ;;  %vm966_vm2 = vmmov 0   ;;  %vm603_vm3 = vcmask 7168  }
  0x27   :  { %v47_v7 = vld [vmem:[#allocation4 + $0x38] sm:$0xff]  ;;  %v755_v8 = vpack.c.bf16 %v42_v5, %v40_v3  ;;  %v44_v10 = vld [vmem:[#allocation4 + $0x20] sm:$0xff]  ;;  %v46_v11 = vld [vmem:[#allocation4 + $0x30] sm:$0xff] }
  0x28   :  { %v757_v9 = vpack.c.bf16 %v47_v7, %v45_v6  ;;  %754 = vmatprep.subr.bf16.mxu0 %v753_v4  ;;  %v155_v12 = vld [vmem:[#allocation4 + $0x58] sm:$0xff]  ;;  %v759_v13 = vpack.c.bf16 %v46_v11, %v44_v10  ;;  %v49_v14 = vld [vmem:[#allocation4 + $0x48] sm:$0x7f]  ;;  %v154_v16 = vld [vmem:[#allocation4 + $0x50] sm:$0xff] }
  0x29   :  { %756 = vmatpush1.bf16.msra.mxu0 %v755_v8  ;;  %v157_v15 = vld [vmem:[#allocation4 + $0x68] sm:$0xff]  ;;  %v156_v17 = vld [vmem:[#allocation4 + $0x60] sm:$0xff]  ;;  %v159_v20 = vld [vmem:[#allocation4 + $0x78] sm:$0xff] }
  0x2a   :  { %758 = vmatprep.subr.bf16.mxu0 %v757_v9  ;;  %v761_v18 = vpack.c.bf16 %v157_v15, %v155_v12  ;;  %v763_v19 = vpack.c.bf16 %v156_v17, %v154_v16  ;;  %v161_v21 = vld [vmem:[#allocation4 + $0x88] sm:$0xff]  ;;  %v158_v22 = vld [vmem:[#allocation4 + $0x70] sm:$0xff]  ;;  %v160_v24 = vld [vmem:[#allocation4 + $0x80] sm:$0xff] }
  0x2b   :  { %v765_v23 = vpack.c.bf16 %v161_v21, %v159_v20  ;;  %v163_v25 = vld [vmem:[#allocation4 + $0x98] sm:$0xff]  ;;  %v165_v26 = vld [vmem:[#allocation4 + $0xa8] sm:$0xff]  ;;  %v767_v27 = vpack.c.bf16 %v160_v24, %v158_v22  ;;  %v48_v28 = vld [vmem:[#allocation4 + $0x40] sm:$0x7f] }
  0x2c   :  { %762 = vmatprep.subr.bf16.mxu1 %v761_v18  ;;  %v769_v29 = vpack.c.bf16 %v165_v26, %v163_v25  ;;  %v162_v30 = vld [vmem:[#allocation4 + $0x90] sm:$0xff]  ;;  %v164_v31 = vld [vmem:[#allocation4 + $0xa0] sm:$0xff]  ;;  %v37_v32 = vld [vmem:[#allocation2] sm:$0xff] }
  0x2d   :  { %760 = vmatpush1.bf16.msra.mxu0 %v759_v13  ;;  %764 = vmatpush1.bf16.msra.mxu1 %v763_v19  ;;  %v167_v33 = vld [vmem:[#allocation4 + $0xb8] sm:$0xff]  ;;  %v169_v34 = vld [vmem:[#allocation4 + $0xc8] sm:$0xff]  ;;  %v771_v35 = vpack.c.bf16 %v164_v31, %v162_v30  ;;  %v166_v37 = vld [vmem:[#allocation4 + $0xb0] sm:$0xff] }
  0x2e   :  { %611 = vmatprep.subr.msk.mxu0 %vm62_vm0, %v49_v14  ;;  %766 = vmatprep.subr.bf16.mxu1 %v765_v23  ;;  %v773_v36 = vpack.c.bf16 %v169_v34, %v167_v33  ;;  %v168_v38 = vld [vmem:[#allocation4 + $0xc0] sm:$0xff]  ;;  %v171_v39 = vld [vmem:[#allocation4 + $0xd8] sm:$0xff]  ;;  %v173_v40 = vld [vmem:[#allocation4 + $0xe8] sm:$0xff] }
  0x2f   :  { %v775_v41 = vpack.c.bf16 %v168_v38, %v166_v37  ;;  %v777_v42 = vpack.c.bf16 %v173_v40, %v171_v39  ;;  %v170_v43 = vld [vmem:[#allocation4 + $0xd0] sm:$0xff]  ;;  %v172_v44 = vld [vmem:[#allocation4 + $0xe0] sm:$0xff]  ;;  %v175_v45 = vld [vmem:[#allocation4 + $0xf8] sm:$0xff] }
  0x30   :  { %v177_v46 = vld [vmem:[#allocation4 + $0x108] sm:$0xff]  ;;  %v779_v47 = vpack.c.bf16 %v172_v44, %v170_v43  ;;  %v174_v49 = vld [vmem:[#allocation4 + $0xf0] sm:$0xff]  ;;  %v176_v50 = vld [vmem:[#allocation4 + $0x100] sm:$0xff] }
  0x31   :  { %612 = vmatpush1.msk.msra.mxu0 %vm62_vm0, %v48_v28  ;;  %768 = vmatpush1.bf16.msra.mxu1 %v767_v27  ;;  %v781_v48 = vpack.c.bf16 %v177_v46, %v175_v45  ;;  %v179_v51 = vld [vmem:[#allocation4 + $0x118] sm:$0xff]  ;;  %v181_v52 = vld [vmem:[#allocation4 + $0x128] sm:$0xff]  ;;  %v783_v53 = vpack.c.bf16 %v176_v50, %v174_v49  ;;  %v178_v55 = vld [vmem:[#allocation4 + $0x110] sm:$0xff] }
  0x32   :  { %613 = vmatmul.mubr.msk.f32.vlgmr.msra.gmra.mrb[0].mxu0 %vm58_vm1, %v37_v32  ;;  %770 = vmatprep.subr.bf16.mxu1 %v769_v29  ;;  %v785_v54 = vpack.c.bf16 %v181_v52, %v179_v51  ;;  %v180_v56 = vld [vmem:[#allocation4 + $0x120] sm:$0xff]  ;;  %v183_v57 = vld [vmem:[#allocation4 + $0x138] sm:$0xff]  ;;  %v185_v58 = vld [vmem:[#allocation4 + $0x148] sm:$0xff] }
  0x33   :  { %v787_v59 = vpack.c.bf16 %v180_v56, %v178_v55  ;;  %v789_v60 = vpack.c.bf16 %v185_v58, %v183_v57  ;;  %v182_v61 = vld [vmem:[#allocation4 + $0x130] sm:$0xff]  ;;  %v184_v62 = vld [vmem:[#allocation4 + $0x140] sm:$0xff]  ;;  %v187_v63 = vld [vmem:[#allocation4 + $0x158] sm:$0xff] }
  0x34   :  { %v189_v1 = vld [vmem:[#allocation4 + $0x168] sm:$0xff]  ;;  %v791_v2 = vpack.c.bf16 %v184_v62, %v182_v61  ;;  %v186_v4 = vld [vmem:[#allocation4 + $0x150] sm:$0xff]  ;;  %v188_v5 = vld [vmem:[#allocation4 + $0x160] sm:$0xff] }
  0x35   :  { %772 = vmatpush1.bf16.msra.mxu1 %v771_v35  ;;  %v793_v3 = vpack.c.bf16 %v189_v1, %v187_v63  ;;  %v191_v6 = vld [vmem:[#allocation4 + $0x178] sm:$0xff]  ;;  %v193_v7 = vld [vmem:[#allocation4 + $0x188] sm:$0xff]  ;;  %v795_v8 = vpack.c.bf16 %v188_v5, %v186_v4  ;;  %v190_v10 = vld [vmem:[#allocation4 + $0x170] sm:$0xff] }
  0x36   :  { %774 = vmatprep.subr.bf16.mxu1 %v773_v36  ;;  %v797_v9 = vpack.c.bf16 %v193_v7, %v191_v6  ;;  %v192_v11 = vld [vmem:[#allocation4 + $0x180] sm:$0xff]  ;;  %v195_v12 = vld [vmem:[#allocation4 + $0x198] sm:$0xff]  ;;  %v197_v13 = vld [vmem:[#allocation4 + $0x1a8] sm:$0xff] }
  0x37   :  { %v799_v14 = vpack.c.bf16 %v192_v11, %v190_v10  ;;  %v801_v15 = vpack.c.bf16 %v197_v13, %v195_v12  ;;  %v194_v16 = vld [vmem:[#allocation4 + $0x190] sm:$0xff]  ;;  %v196_v17 = vld [vmem:[#allocation4 + $0x1a0] sm:$0xff]  ;;  %v199_v18 = vld [vmem:[#allocation4 + $0x1b8] sm:$0xff] }
  0x38   :  { %v201_v19 = vld [vmem:[#allocation4 + $0x1c8] sm:$0xff]  ;;  %v803_v20 = vpack.c.bf16 %v196_v17, %v194_v16  ;;  %v198_v22 = vld [vmem:[#allocation4 + $0x1b0] sm:$0xff]  ;;  %v200_v23 = vld [vmem:[#allocation4 + $0x1c0] sm:$0xff] }
  0x39   :  { %776 = vmatpush1.bf16.msra.mxu1 %v775_v41  ;;  %v805_v21 = vpack.c.bf16 %v201_v19, %v199_v18  ;;  %v203_v24 = vld [vmem:[#allocation4 + $0x1d8] sm:$0xff]  ;;  %v205_v25 = vld [vmem:[#allocation4 + $0x1e8] sm:$0xff]  ;;  %v807_v26 = vpack.c.bf16 %v200_v23, %v198_v22  ;;  %v202_v28 = vld [vmem:[#allocation4 + $0x1d0] sm:$0xff]  ;;  %v50_v19 = vlaneseq }
  0x3a   :  { %778 = vmatprep.subr.bf16.mxu1 %v777_v42  ;;  %v809_v27 = vpack.c.bf16 %v205_v25, %v203_v24  ;;  %v204_v29 = vld [vmem:[#allocation4 + $0x1e0] sm:$0xff]  ;;  %v207_v30 = vld [vmem:[#allocation4 + $0x1f8] sm:$0xff]  ;;  %v209_v31 = vld [vmem:[#allocation4 + $0x208] sm:$0xff] }
  0x3b   :  { %v811_v32 = vpack.c.bf16 %v204_v29, %v202_v28  ;;  %v813_v33 = vpack.c.bf16 %v209_v31, %v207_v30  ;;  %v206_v34 = vld [vmem:[#allocation4 + $0x1f0] sm:$0xff]  ;;  %v208_v35 = vld [vmem:[#allocation4 + $0x200] sm:$0xff]  ;;  %v211_v37 = vld [vmem:[#allocation4 + $0x218] sm:$0xff] }
  0x3c   :  { %v815_v36 = vpack.c.bf16 %v208_v35, %v206_v34  ;;  %v213_v38 = vld [vmem:[#allocation4 + $0x228] sm:$0xff]  ;;  %v210_v40 = vld [vmem:[#allocation4 + $0x210] sm:$0xff]  ;;  %v212_v41 = vld [vmem:[#allocation4 + $0x220] sm:$0xff] }
  0x3d   :  { %780 = vmatpush1.bf16.msra.mxu1 %v779_v47  ;;  %v817_v39 = vpack.c.bf16 %v213_v38, %v211_v37  ;;  %v819_v42 = vpack.c.bf16 %v212_v41, %v210_v40  ;;  %v215_v43 = vld [vmem:[#allocation4 + $0x238] sm:$0xff]  ;;  %v217_v44 = vld [vmem:[#allocation4 + $0x248] sm:$0xff]  ;;  %v214_v46 = vld [vmem:[#allocation4 + $0x230] sm:$0xff] }
  0x3e   :  { %782 = vmatprep.subr.bf16.mxu1 %v781_v48  ;;  %v821_v45 = vpack.c.bf16 %v217_v44, %v215_v43  ;;  %v216_v47 = vld [vmem:[#allocation4 + $0x240] sm:$0xff]  ;;  %v319_v49 = vld [vmem:[#allocation4 + $0x350] sm:$0xff]  ;;  %v39_v23 = vld [vmem:[#allocation4 + $0x658] sm:$0xff] }
  0x3f   :  { %v823_v48 = vpack.c.bf16 %v216_v47, %v214_v46  ;;  %v320_v50 = vld [vmem:[#allocation4 + $0x360] sm:$0xff]  ;;  %v303_v51 = vld [vmem:[#allocation4 + $0x250] sm:$0xff] }
  0x40   :  { %v825_v52 = vpack.c.bf16 %v320_v50, %v319_v49  ;;  %v322_v55 = vld [vmem:[#allocation4 + $0x380] sm:$0xff]  ;;  %v305_v58 = vld [vmem:[#allocation4 + $0x270] sm:$0xff] }
  0x41   :  { %784 = vmatpush1.bf16.msra.mxu1 %v783_v53  ;;  %v304_v53 = vld [vmem:[#allocation4 + $0x260] sm:$0xff]  ;;  %v307_v1 = vld [vmem:[#allocation4 + $0x290] sm:$0xff] }
  0x42   :  { %786 = vmatprep.subr.bf16.mxu1 %v785_v54  ;;  %v321_v54 = vld [vmem:[#allocation4 + $0x370] sm:$0xff]  ;;  %v827_v56 = vpack.c.bf16 %v304_v53, %v303_v51  ;;  %826 = vmatprep.subr.bf16.mxu0 %v825_v52  ;;  %v324_v61 = vld [vmem:[#allocation4 + $0x3a0] sm:$0xff] }
  0x43   :  { %v829_v57 = vpack.c.bf16 %v322_v55, %v321_v54  ;;  %v326_v4 = vld [vmem:[#allocation4 + $0x3c0] sm:$0xff]  ;;  %v309_v7 = vld [vmem:[#allocation4 + $0x2b0] sm:$0xff]  ;;  %v965_v54 = vmov 0.0|0.0  }
  0x44   :  { %828 = vmatpush3.bf16.msra.mxu0 %v827_v56  ;;  %v328_v10 = vld [vmem:[#allocation4 + $0x3e0] sm:$0xff]  ;;  %v311_v13 = vld [vmem:[#allocation4 + $0x2d0] sm:$0xff] }
  0x45   :  { %788 = vmatpush1.bf16.msra.mxu1 %v787_v59  ;;  %v306_v59 = vld [vmem:[#allocation4 + $0x280] sm:$0xff]  ;;  %830 = vmatprep.subr.bf16.mxu0 %v829_v57  ;;  %v1019_v22 = vld [vmem:[#allocation4 + $0x650] sm:$0xff] }
  0x46   :  { %790 = vmatprep.subr.bf16.mxu1 %v789_v60  ;;  %v323_v60 = vld [vmem:[#allocation4 + $0x390] sm:$0xff]  ;;  %v831_v62 = vpack.c.bf16 %v306_v59, %v305_v58  ;;  %v330_v16 = vld [vmem:[#allocation4 + $0x400] sm:$0xff] }
  0x47   :  { %v833_v63 = vpack.c.bf16 %v324_v61, %v323_v60  ;;  %v314_v40 = vld [vmem:[#allocation4 + $0x300] sm:$0xff]  ;;  %v317_v51 = vld [vmem:[#allocation4 + $0x330] sm:$0xff] }
  0x48   :  { %832 = vmatpush3.bf16.msra.mxu0 %v831_v62  ;;  %v332_v43 = vld [vmem:[#allocation4 + $0x420] sm:$0xff] }
  0x49   :  { %792 = vmatpush1.bf16.msra.mxu1 %v791_v2  ;;  %v308_v2 = vld [vmem:[#allocation4 + $0x2a0] sm:$0xff]  ;;  %834 = vmatprep.subr.bf16.mxu0 %v833_v63 }
  0x4a   :  { %794 = vmatprep.subr.bf16.mxu1 %v793_v3  ;;  %v325_v3 = vld [vmem:[#allocation4 + $0x3b0] sm:$0xff]  ;;  %v835_v5 = vpack.c.bf16 %v308_v2, %v307_v1  ;;  %v316_v46 = vld [vmem:[#allocation4 + $0x320] sm:$0xff] }
  0x4b   :  { %v837_v6 = vpack.c.bf16 %v326_v4, %v325_v3  ;;  %v334_v49 = vld [vmem:[#allocation4 + $0x440] sm:$0xff]  ;;  %v409_v2 = vld [vmem:[#allocation4 + $0x450] sm:$0xff] }
  0x4c   :  { %836 = vmatpush3.bf16.msra.mxu0 %v835_v5  ;;  %v318_v52 = vld [vmem:[#allocation4 + $0x340] sm:$0xff] }
  0x4d   :  { %796 = vmatpush1.bf16.msra.mxu1 %v795_v8  ;;  %v310_v8 = vld [vmem:[#allocation4 + $0x2c0] sm:$0xff]  ;;  %838 = vmatprep.subr.bf16.mxu0 %v837_v6  ;;  %v855_v53 = vpack.c.bf16 %v318_v52, %v317_v51 }
  0x4e   :  { %798 = vmatprep.subr.bf16.mxu1 %v797_v9  ;;  %v327_v9 = vld [vmem:[#allocation4 + $0x3d0] sm:$0xff]  ;;  %v839_v11 = vpack.c.bf16 %v310_v8, %v309_v7  ;;  %v410_v3 = vld [vmem:[#allocation4 + $0x460] sm:$0xff] }
  0x4f   :  { %v841_v12 = vpack.c.bf16 %v328_v10, %v327_v9  ;;  %v858_v6 = vpack.c.bf16 %v410_v3, %v409_v2  ;;  %v411_v8 = vld [vmem:[#allocation4 + $0x470] sm:$0xff]  ;;  %v412_v9 = vld [vmem:[#allocation4 + $0x480] sm:$0xff] }
  0x50   :  { %840 = vmatpush3.bf16.msra.mxu0 %v839_v11  ;;  %v861_v10 = vpack.c.bf16 %v412_v9, %v411_v8  ;;  %v413_v11 = vld [vmem:[#allocation4 + $0x490] sm:$0xff] }
  0x51   :  { %800 = vmatpush1.bf16.msra.mxu1 %v799_v14  ;;  %v312_v14 = vld [vmem:[#allocation4 + $0x2e0] sm:$0xff]  ;;  %842 = vmatprep.subr.bf16.mxu0 %v841_v12 }
  0x52   :  { %802 = vmatprep.subr.bf16.mxu1 %v801_v15  ;;  %v329_v15 = vld [vmem:[#allocation4 + $0x3f0] sm:$0xff]  ;;  %v843_v17 = vpack.c.bf16 %v312_v14, %v311_v13  ;;  %v414_v12 = vld [vmem:[#allocation4 + $0x4a0] sm:$0xff] }
  0x53   :  { %v845_v18 = vpack.c.bf16 %v330_v16, %v329_v15  ;;  %v864_v13 = vpack.c.bf16 %v414_v12, %v413_v11  ;;  %v415_v14 = vld [vmem:[#allocation4 + $0x4b0] sm:$0xff]  ;;  %v416_v15 = vld [vmem:[#allocation4 + $0x4c0] sm:$0xff] }
  0x54   :  { %844 = vmatpush3.bf16.msra.mxu0 %v843_v17  ;;  %v867_v16 = vpack.c.bf16 %v416_v15, %v415_v14  ;;  %v417_v17 = vld [vmem:[#allocation4 + $0x4d0] sm:$0xff] }
  0x55   :  { %804 = vmatpush1.bf16.msra.mxu1 %v803_v20  ;;  %846 = vmatprep.subr.bf16.mxu0 %v845_v18  ;;  %v1016_v20 = vshrl.u32 %v50_v19, 7  ;;  %v418_v18 = vld [vmem:[#allocation4 + $0x4e0] sm:$0xff] }
  0x56   :  { %806 = vmatprep.subr.bf16.mxu1 %v805_v21  ;;  %v870_v19 = vpack.c.bf16 %v418_v18, %v417_v17 }
  0x57   :  { %v52_v21 = vsub.s32 0, %v1016_v20  ;;  %v144_v25 = vsub.s32 7, %v1016_v20  ;;  %v220_v55 = vsub.s32 1, %v1016_v20  ;;  %v337_v51 = vsub.s32 2, %v1016_v20 }
  0x58   :  { %v518_v3 = vsub.s32 4, %v1016_v20  ;;  %v600_v12 = vsub.s32 6, %v1016_v20 }
  0x59   :  { %808 = vmatpush1.bf16.msra.mxu1 %v807_v26  ;;  %v53_v24 = vrot.slane %v1019_v22, %v52_v21  ;;  %v57_v26 = vrot.slane %v39_v23, %v52_v21  ;;  %v145_v29 = vrot.slane %v1019_v22, %v144_v25  ;;  %v221_v56 = vrot.slane %v1019_v22, %v220_v55  ;;  %v419_v21 = vld [vmem:[#allocation4 + $0x4f0] sm:$0xff] }
  0x5a   :  { %810 = vmatprep.subr.bf16.mxu1 %v809_v27  ;;  %v225_v57 = vrot.slane %v39_v23, %v220_v55 }
  0x5d   :  { %812 = vmatpush1.bf16.msra.mxu1 %v811_v32  ;;  %v149_v32 = vrot.slane %v39_v23, %v144_v25  ;;  %v420_v23 = vld [vmem:[#allocation4 + $0x500] sm:$0xff]  ;;  %v421_v25 = vld [vmem:[#allocation4 + $0x510] sm:$0xff] }
  0x5e   :  { %814 = vmatprep.subr.bf16.mxu1 %v813_v33 }
  0x61   :  { %816 = vmatpush1.bf16.msra.mxu1 %v815_v36 }
  0x62   :  { %818 = vmatprep.subr.bf16.mxu1 %v817_v39  ;;  %v313_v39 = vld [vmem:[#allocation4 + $0x2f0] sm:$0xff] }
  0x63   :  { %v847_v41 = vpack.c.bf16 %v314_v40, %v313_v39  ;;  %v506_v40 = vld [vmem:[#allocation4 + $0x5b0] sm:$0xff] }
  0x65   :  { %820 = vmatpush1.bf16.msra.mxu1 %v819_v42  ;;  %848 = vmatpush3.bf16.msra.mxu0 %v847_v41  ;;  %v331_v42 = vld [vmem:[#allocation4 + $0x410] sm:$0xff]  ;;  %v507_v41 = vld [vmem:[#allocation4 + $0x5c0] sm:$0xff] }
  0x66   :  { %822 = vmatprep.subr.bf16.mxu1 %v821_v45  ;;  %v849_v44 = vpack.c.bf16 %v332_v43, %v331_v42  ;;  %v315_v45 = vld [vmem:[#allocation4 + $0x310] sm:$0xff]  ;;  %v891_v42 = vpack.c.bf16 %v507_v41, %v506_v40  ;;  %v509_v43 = vld [vmem:[#allocation4 + $0x5e0] sm:$0xff] }
  0x67   :  { %v851_v47 = vpack.c.bf16 %v316_v46, %v315_v45  ;;  %v510_v45 = vld [vmem:[#allocation4 + $0x5f0] sm:$0xff]  ;;  %v511_v46 = vld [vmem:[#allocation4 + $0x600] sm:$0xff] }
  0x68   :  { %850 = vmatprep.subr.bf16.mxu0 %v849_v44 }
  0x69   :  { %824 = vmatpush1.bf16.msra.mxu1 %v823_v48  ;;  %852 = vmatpush3.bf16.msra.mxu0 %v851_v47  ;;  %v333_v48 = vld [vmem:[#allocation4 + $0x430] sm:$0xff]  ;;  %v897_v47 = vpack.c.bf16 %v511_v46, %v510_v45 }
  0x6a   :  { %v853_v50 = vpack.c.bf16 %v334_v49, %v333_v48  ;;  %881 = vmatprep.subr.bf16.mxu1 %v965_v54  ;;  %v512_v48 = vld [vmem:[#allocation4 + $0x610] sm:$0xff]  ;;  %v513_v49 = vld [vmem:[#allocation4 + $0x620] sm:$0xff] }
  0x6c   :  { %854 = vmatprep.subr.bf16.mxu0 %v853_v50  ;;  %v900_v50 = vpack.c.bf16 %v513_v49, %v512_v48 }
  0x6d   :  { %856 = vmatpush3.bf16.msra.mxu0 %v855_v53  ;;  %v338_v53 = vrot.slane %v1019_v22, %v337_v51 }
  0x6e   :  { %857 = vmatprep.subr.bf16.mxu0 %v965_v54 }
 0x105   :  { %v135_v27 = vpop.f32.mrb[0].mxu0 }
 0x106   :  { %v136_v28 = vadd.f32 %v135_v27, %v53_v24  ;;  %v137_v30 = vpop.f32.mrb[1].mxu0  ;;  %v873_v24 = vpack.c.bf16 %v420_v23, %v419_v21 }
 0x107   :  { %v138_v31 = vadd.f32 %v137_v30, %v57_v26  ;;  %v422_v26 = vld [vmem:[#allocation4 + $0x520] sm:$0xff] }
 0x108   :  { %v140_v33 = vmin.f32 %v136_v28, 0.0  ;;  %v876_v27 = vpack.c.bf16 %v422_v26, %v421_v25 }
 0x109   :  { %v141_v34 = vmin.f32 %v138_v31, 0.0 }
 0x10a   :  { %v150_v35 = vmul.f32 %v145_v29, %v140_v33  ;;  %v502_v33 = vld [vmem:[#allocation4 + $0x570] sm:$0xff] }
 0x10b   :  { %v151_v36 = vmul.f32 %v149_v32, %v141_v34 }
 0x10c   :  { %v152_v38 = vsub.f32 %v136_v28, %v150_v35  ;;  %v423_v28 = vld [vmem:[#allocation4 + $0x530] sm:$0xff]  ;;  %v503_v35 = vld [vmem:[#allocation4 + $0x580] sm:$0xff] }
 0x10d   :  { %v153_v37 = vsub.f32 %v138_v31, %v151_v36  ;;  %v500_v31 = vld [vmem:[#allocation4 + $0x550] sm:$0xff]  ;;  %v885_v36 = vpack.c.bf16 %v503_v35, %v502_v33 }
 0x10f   :  { %290 = vmatprep.mubr.f32.mxu1 %v153_v37  ;;  %v504_v37 = vld [vmem:[#allocation4 + $0x590] sm:$0xff] }
 0x110   :  { %291 = vmatmul.mubr.f32.vlgmr.msra.gmra.mrb[0].mxu1 %v152_v38  ;;  %v505_v38 = vld [vmem:[#allocation4 + $0x5a0] sm:$0xff] }
 0x111   :  { %750 = vmatprep.mubr.msk.f32.mxu1 %vm966_vm2, %v964_v0  ;;  %v888_v39 = vpack.c.bf16 %v505_v38, %v504_v37 }
 0x1e3   :  { %v292_v58 = vpop.f32.mrb[0].mxu1 }
 0x1e4   :  { %v293_v59 = vadd.f32 %v292_v58, %v221_v56  ;;  %v294_v60 = vpop.f32.mrb[1].mxu1  ;;  %v514_v58 = vld [vmem:[#allocation4 + $0x630] sm:$0xff] }
 0x1e5   :  { %v295_v61 = vadd.f32 %v294_v60, %v225_v57 }
 0x1e6   :  { %v297_v62 = vmin.f32 %v293_v59, 0.0 }
 0x1e7   :  { %v298_v63 = vmin.f32 %v295_v61, 0.0 }
 0x1e8   :  { %v299_v1 = vmul.f32 %v297_v62, %v145_v29  ;;  %v424_v29 = vld [vmem:[#allocation4 + $0x540] sm:$0xff] }
 0x1e9   :  { %v300_v4 = vmul.f32 %v298_v63, %v149_v32  ;;  %v879_v30 = vpack.c.bf16 %v424_v29, %v423_v28  ;;  %v501_v32 = vld [vmem:[#allocation4 + $0x560] sm:$0xff] }
 0x1ea   :  { %v301_v7 = vsub.f32 %v293_v59, %v299_v1  ;;  %v882_v34 = vpack.c.bf16 %v501_v32, %v500_v31  ;;  %v515_v59 = vld [vmem:[#allocation4 + $0x640] sm:$0xff] }
 0x1eb   :  { %v302_v5 = vsub.f32 %v295_v61, %v300_v4  ;;  %v903_v60 = vpack.c.bf16 %v515_v59, %v514_v58  ;;  %v427_v61 = vsub.s32 3, %v1016_v20  ;;  %v519_v4 = vrot.slane %v1019_v22, %v518_v3 }
 0x1ec   :  { %883 = vmatpush3.bf16.msra.mxu1 %v882_v34 }
 0x1ed   :  { %403 = vmatprep.mubr.f32.mxu0 %v302_v5  ;;  %884 = vmatprep.subr.bf16.mxu1 %v965_v54  ;;  %v428_v62 = vrot.slane %v1019_v22, %v427_v61  ;;  %v593_v5 = vsub.s32 5, %v1016_v20 }
 0x1ee   :  { %404 = vmatmul.mubr.f32.vlgmr.msra.gmra.mrb[2].mxu0 %v301_v7 }
 0x1ef   :  { %859 = vmatpush3.bf16.msra.mxu0 %v858_v6  ;;  %715 = vmatprep.mubr.msk.f32.mxu0 %vm966_vm2, %v964_v0  ;;  %v508_v0 = vld [vmem:[#allocation4 + $0x5d0] sm:$0xff]  ;;  %v594_v9 = vrot.slane %v1019_v22, %v593_v5 }
 0x1f0   :  { %860 = vmatprep.subr.bf16.mxu0 %v965_v54  ;;  %886 = vmatpush3.bf16.msra.mxu1 %v885_v36  ;;  %v894_v44 = vpack.c.bf16 %v509_v43, %v508_v0 }
 0x1f1   :  { %887 = vmatprep.subr.bf16.mxu1 %v965_v54 }
 0x1f3   :  { %862 = vmatpush3.bf16.msra.mxu0 %v861_v10 }
 0x1f4   :  { %863 = vmatprep.subr.bf16.mxu0 %v965_v54  ;;  %889 = vmatpush3.bf16.msra.mxu1 %v888_v39 }
 0x1f5   :  { %890 = vmatprep.subr.bf16.mxu1 %v965_v54 }
 0x1f7   :  { %865 = vmatpush3.bf16.msra.mxu0 %v864_v13  ;;  %v601_v13 = vrot.slane %v1019_v22, %v600_v12 }
 0x1f8   :  { %866 = vmatprep.subr.bf16.mxu0 %v965_v54  ;;  %892 = vmatpush3.bf16.msra.mxu1 %v891_v42 }
 0x1f9   :  { %893 = vmatprep.subr.bf16.mxu1 %v965_v54 }
 0x1fb   :  { %868 = vmatpush3.bf16.msra.mxu0 %v867_v16 }
 0x1fc   :  { %869 = vmatprep.subr.bf16.mxu0 %v965_v54  ;;  %895 = vmatpush3.bf16.msra.mxu1 %v894_v44 }
 0x1fd   :  { %896 = vmatprep.subr.bf16.mxu1 %v965_v54 }
 0x1ff   :  { %871 = vmatpush3.bf16.msra.mxu0 %v870_v19 }
 0x200   :  { %872 = vmatprep.subr.bf16.mxu0 %v965_v54  ;;  %898 = vmatpush3.bf16.msra.mxu1 %v897_v47 }
 0x201   :  { %899 = vmatprep.subr.bf16.mxu1 %v965_v54 }
 0x203   :  { %874 = vmatpush3.bf16.msra.mxu0 %v873_v24 }
 0x204   :  { %875 = vmatprep.subr.bf16.mxu0 %v965_v54  ;;  %901 = vmatpush3.bf16.msra.mxu1 %v900_v50 }
 0x205   :  { %902 = vmatprep.subr.bf16.mxu1 %v965_v54 }
 0x207   :  { %877 = vmatpush3.bf16.msra.mxu0 %v876_v27 }
 0x208   :  { %878 = vmatprep.subr.bf16.mxu0 %v965_v54  ;;  %904 = vmatpush3.bf16.msra.mxu1 %v903_v60 }
 0x20b   :  { %880 = vmatpush3.bf16.msra.mxu0 %v879_v30 }
 0x2c1   :  { %v646_v52 = vpop.f32.mrb[2].mxu0 }
 0x2c2   :  { %v647_v55 = vpop.f32.mrb[3].mxu0 }
 0x2c3   :  { %v648_v56 = vadd.f32 %v647_v55, %v646_v52 }
 0x2c5   :  { %v406_v57 = vadd.f32 %v648_v56, %v338_v53 }
 0x2c7   :  { %716 = vmatmul.mubr.f32.vlgmr.msra.gmra.mrb[4].mxu0 %v406_v57 }
 0x39a   :  { %v495_v63 = vpop.f32.mrb[4].mxu0 }
 0x39b   :  { %v496_v1 = vadd.f32 %v495_v63, %v428_v62  ;;  %v717_v54 = vpop.f32.mrb[5].mxu0 }
 0x39d   :  { %v499_v2 = vmax.f32 %v496_v1, 0.0 }
 0x39f   :  { %751 = vmatmul.mubr.f32.vlgmr.msra.gmra.mrb[2].mxu1 %v499_v2 }
 0x472   :  { %v586_v6 = vpop.f32.mrb[2].mxu1 }
 0x473   :  { %v587_v7 = vadd.f32 %v586_v6, %v519_v4  ;;  %v752_v8 = vpop.f32.mrb[3].mxu1 }
 0x475   :  { %v590_v10 = vmax.f32 %v587_v7, 0.0 }
 0x477   :  { %v595_v11 = vmul.f32 %v594_v9, %v590_v10 }
 0x479   :  { %596 = vadd.xlane.f32.xlu0 %v595_v11 }
 0x506   :  { %v597_v14 = vpop.xlane.xlu0 %596 }
 0x507   :  { %v602_v15 = vadd.f32 %v601_v13, %v597_v14 }
 0x509   :  { %604 = vst.msk [vmem:[%s1059_s2] sm:$0xff] %vm603_vm3, %v602_v15 }
 0x50a   :  { %609 = vsyncpa [#allocation3], 1 }
 0x50b   :  { %610 = vsyncpa [#allocation5], 1 }

</bundles_post_ra>
